<compile_context>
chip_gen: v6e
topology: v6e:2x2x1
jax: 0.10.0
libtpu: 0.0.40
codegen_flags: <defaults>
</compile_context>

<pallas_src>
import functools
import math

import jax
import jax.numpy as jnp
import numpy as np
from jax.experimental import pallas as pl
from jax.experimental.pallas import tpu as pltpu


def _round_up(n: int, m: int) -> int:
    return ((n + m - 1) // m) * m


# ---------------------------------------------------------------------------
# Kernel
# ---------------------------------------------------------------------------
def _bidir_traj_kernel(x_fwd_ref, x_bwd_ref, alpha_ref, bias_ref, *rest,
                       num_hidden, half_seq_len, seq_len, output_size,
                       out_width):
    """Fused forward pass for one batch block.

    rest = (fwd_w[0..H], bwd_w[0..H], fus_w[0..1], o_ref).
    Weights are bf16 (in_pad, out_pad); biases packed f32 [rows, max_w] (VMEM);
    PReLU alphas packed f32 [1, 2H+1] (SMEM).
    """
    o_ref = rest[-1]
    w_refs = rest[:-1]
    nlin = num_hidden + 1
    fwd_w = w_refs[:nlin]
    bwd_w = w_refs[nlin:2 * nlin]
    fus_w = w_refs[2 * nlin:]

    def run_mlp(x, ws, bias_row0, alpha0):
        h = x  # f32 activations
        for li in range(len(ws)):
            w = ws[li][...]                                    # bf16 (in_pad, out_pad)
            width = w.shape[1]
            b = bias_ref[bias_row0 + li:bias_row0 + li + 1, 0:width]   # (1, width) f32
            z = jnp.dot(h.astype(jnp.bfloat16), w,
                        preferred_element_type=jnp.float32) + b
            if li < len(ws) - 1:
                a = alpha_ref[0, alpha0 + li]                  # scalar PReLU weight (SMEM)
                h = jnp.where(z > 0, z, a * z)
                # TODO(synk): nn.Dropout(0.1) omitted (inference mode => identity).
            else:
                h = z
        return h

    fwd_flat = run_mlp(x_fwd_ref[...], fwd_w, 0, 0)
    bwd_flat = run_mlp(x_bwd_ref[...], bwd_w, nlin, num_hidden)

    blk = fwd_flat.shape[0]
    oc = output_size
    last = (half_seq_len - 1) * oc

    # fusion_input = cat(forward_traj[:, -1, :], flipped_backward_traj[:, 0, :])
    #              = cat(fwd_flat[:, last:last+oc], bwd_flat[:, last:last+oc])
    fin_pad = fus_w[0].shape[0]
    f_pieces = [fwd_flat[:, last:last + oc], bwd_flat[:, last:last + oc]]
    if fin_pad > 2 * oc:
        f_pieces.append(jnp.zeros((blk, fin_pad - 2 * oc), jnp.float32))
    fusion_in = jnp.concatenate(f_pieces, axis=1)
    fusion_out = run_mlp(fusion_in, fus_w, 2 * nlin, 2 * num_hidden)

    # Assemble the full trajectory. The flip of the backward half is just a
    # reversed read order here (free inside the kernel).
    pieces = []
    if last > 0:
        pieces.append(fwd_flat[:, :last])                      # rows 0 .. half-2
    pieces.append(fusion_out[:, :oc])                          # row half-1
    for t in range(half_seq_len, 2 * half_seq_len - 1):        # rows half .. 2*half-2
        r = 2 * half_seq_len - 2 - t                           # reversed bwd rows
        pieces.append(bwd_flat[:, r * oc:(r + 1) * oc])
    if 2 * half_seq_len - 1 < seq_len:                         # even seq_len: duplicate last point
        pieces.append(bwd_flat[:, 0:oc])
    used = seq_len * oc
    if out_width > used:                                       # lane padding to a 128 multiple
        pieces.append(jnp.zeros((blk, out_width - used), jnp.float32))
    o_ref[...] = jnp.concatenate(pieces, axis=1)               # single lane-dense store


# ---------------------------------------------------------------------------
# Parameter init (PyTorch nn.Linear / nn.PReLU shapes; U(-1/sqrt(fan_in), +),
# PReLU a=0.25). Weights stored transposed (in, out) so y = x @ W + b, padded to
# multiples of 128 and cast to bf16.
# ---------------------------------------------------------------------------
def _init_linear(key, fan_in, fan_out, in_pad, out_pad):
    kw, kb = jax.random.split(key)
    bound = 1.0 / math.sqrt(fan_in)
    w = jax.random.uniform(kw, (fan_in, fan_out), jnp.float32, -bound, bound)
    b = jax.random.uniform(kb, (fan_out,), jnp.float32, -bound, bound)
    w_p = jnp.zeros((in_pad, out_pad), jnp.float32).at[:fan_in, :fan_out].set(w)
    b_p = jnp.zeros((out_pad,), jnp.float32).at[:fan_out].set(b)
    return w_p.astype(jnp.bfloat16), b_p


def _init_mlp(key, in_size, hidden_sizes, out_size):
    sizes = [in_size] + list(hidden_sizes) + [out_size]
    pads = [_round_up(s, 128) for s in sizes]
    keys = jax.random.split(key, len(sizes) - 1)
    ws, bs = [], []
    for i in range(len(sizes) - 1):
        w, b = _init_linear(keys[i], sizes[i], sizes[i + 1], pads[i], pads[i + 1])
        ws.append(w)
        bs.append(b)
    return ws, bs


class BidirectionalPathGeneratorPallas:
    """JAX/Pallas re-implementation of BidirectionalPathGenerator.forward."""

    def __init__(self, key, input_size, output_size, hidden_sizes, seq_len,
                 batch_block=256):
        self.seq_len = seq_len
        self.half_seq_len = (seq_len + 1) // 2
        self.output_size = output_size
        self.num_hidden = len(hidden_sizes)
        self.input_size = input_size
        self.in_pad = _round_up(input_size, 128)
        self.out_width = _round_up(seq_len * output_size, 128)
        self.batch_block = batch_block

        k_fwd, k_bwd, k_fus = jax.random.split(key, 3)
        self.fwd_ws, self.fwd_bs = _init_mlp(
            k_fwd, input_size, hidden_sizes, output_size * self.half_seq_len)
        self.bwd_ws, self.bwd_bs = _init_mlp(
            k_bwd, input_size, hidden_sizes, output_size * self.half_seq_len)
        # fusion_network = Linear(2*out, out) -> PReLU -> Linear(out, out)
        self.fus_ws, self.fus_bs = _init_mlp(
            k_fus, output_size * 2, [output_size], output_size)

        # Pack biases into one VMEM array, PReLU alphas into one SMEM array.
        all_bs = self.fwd_bs + self.bwd_bs + self.fus_bs
        max_w = max(int(b.shape[0]) for b in all_bs)
        bias_pack = np.zeros((len(all_bs), max_w), np.float32)
        for i, b in enumerate(all_bs):
            bias_pack[i, :b.shape[0]] = np.asarray(b)
        self.bias_pack = jnp.asarray(bias_pack)
        self.alphas = jnp.full((1, 2 * self.num_hidden + 1), 0.25, jnp.float32)

        self.all_ws = list(self.fwd_ws) + list(self.bwd_ws) + list(self.fus_ws)

    def __call__(self, start_encoding, end_encoding):
        batch = start_encoding.shape[0]
        bb = self.batch_block if batch >= self.batch_block else _round_up(batch, 8)
        pb = _round_up(batch, bb)
        grid = (pb // bb,)

        def pad_x(x):
            xp = jnp.zeros((pb, self.in_pad), jnp.float32)
            return xp.at[:batch, :self.input_size].set(x.astype(jnp.float32))

        x_fwd = pad_x(start_encoding)
        x_bwd = pad_x(end_encoding)

        kernel = functools.partial(
            _bidir_traj_kernel,
            num_hidden=self.num_hidden,
            half_seq_len=self.half_seq_len,
            seq_len=self.seq_len,
            output_size=self.output_size,
            out_width=self.out_width,
        )

        def const_spec(a):
            return pl.BlockSpec(a.shape, lambda i: (0, 0))

        in_specs = [
            pl.BlockSpec((bb, self.in_pad), lambda i: (i, 0)),
            pl.BlockSpec((bb, self.in_pad), lambda i: (i, 0)),
            pl.BlockSpec(memory_space=pltpu.MemorySpace.SMEM),   # packed alphas
            const_spec(self.bias_pack),                           # packed biases
        ] + [const_spec(w) for w in self.all_ws]
        out_spec = pl.BlockSpec((bb, self.out_width), lambda i: (i, 0))

        param_bytes = sum(int(np.prod(w.shape)) * 2 for w in self.all_ws) \
            + int(self.bias_pack.size) * 4
        act_bytes = bb * max(self.in_pad, int(self.bias_pack.shape[1]),
                             self.out_width) * 4
        vmem_est = param_bytes + 8 * act_bytes + (2 << 20)
        vmem_limit = int(max(32 << 20, min(2 * vmem_est, 128 << 20)))

        flops = 2 * pb * sum(int(w.shape[0]) * int(w.shape[1]) for w in self.all_ws)
        bytes_accessed = (2 * pb * self.in_pad * 4 + param_bytes
                          + int(self.alphas.size) * 4 + pb * self.out_width * 4)

        out_flat = pl.pallas_call(
            kernel,
            out_shape=jax.ShapeDtypeStruct((pb, self.out_width), jnp.float32),
            grid=grid,
            in_specs=in_specs,
            out_specs=out_spec,
            compiler_params=pltpu.CompilerParams(
                dimension_semantics=("parallel",),
                vmem_limit_bytes=vmem_limit),
            cost_estimate=pl.CostEstimate(
                flops=flops, transcendentals=0, bytes_accessed=bytes_accessed),
        )(x_fwd, x_bwd, self.alphas, self.bias_pack, *self.all_ws)

        traj = out_flat[:batch, :self.seq_len * self.output_size]
        return traj.reshape(batch, self.seq_len, self.output_size)


# ---------------------------------------------------------------------------
# Pure-JAX reference (same padded bf16 params / same cast path) for validation.
# ---------------------------------------------------------------------------
def _reference_forward(model, start, end):
    B = start.shape[0]
    H = model.num_hidden
    half, oc = model.half_seq_len, model.output_size

    def pad_x(x):
        xp = jnp.zeros((B, model.in_pad), jnp.float32)
        return xp.at[:, :model.input_size].set(x)

    def mlp(x, ws, bs, a0):
        h = x
        for i in range(len(ws)):
            z = jnp.dot(h.astype(jnp.bfloat16), ws[i],
                        preferred_element_type=jnp.float32) + bs[i]
            if i < len(ws) - 1:
                h = jnp.where(z > 0, z, model.alphas[0, a0 + i] * z)
            else:
                h = z
        return h

    fwd = mlp(pad_x(start), model.fwd_ws, model.fwd_bs, 0)[:, :half * oc]
    fwd = fwd.reshape(B, half, oc)
    bwd = mlp(pad_x(end), model.bwd_ws, model.bwd_bs, H)[:, :half * oc]
    bwd = jnp.flip(bwd.reshape(B, half, oc), axis=1)

    fin = jnp.concatenate([fwd[:, -1, :], bwd[:, 0, :]], axis=1)
    fin_p = jnp.zeros((B, model.fus_ws[0].shape[0]), jnp.float32)
    fin_p = fin_p.at[:, :2 * oc].set(fin)
    fp = mlp(fin_p, model.fus_ws, model.fus_bs, 2 * H)[:, :oc][:, None, :]

    traj = jnp.concatenate([fwd[:, :-1, :], fp, bwd[:, 1:, :]], axis=1)
    if traj.shape[1] < model.seq_len:
        traj = jnp.concatenate([traj, traj[:, -1:, :]], axis=1)
    elif traj.shape[1] > model.seq_len:
        traj = traj[:, :model.seq_len, :]
    return traj


if __name__ == "__main__":
    key = jax.random.PRNGKey(0)
    k_params, k_start, k_end = jax.random.split(key, 3)

    # Small shapes consistent with the module's forward signature.
    batch = 4
    input_size = 32
    output_size = 8
    seq_len = 8                      # half_seq_len = 4; 2*4-1 = 7 < 8 exercises padding branch
    hidden_sizes = [64, 48, 32]      # shrunk version of the default hidden stack

    model = BidirectionalPathGeneratorPallas(
        k_params, input_size, output_size, hidden_sizes, seq_len)

    start_encoding = jax.random.normal(k_start, (batch, input_size), jnp.float32)
    end_encoding = jax.random.normal(k_end, (batch, input_size), jnp.float32)

    traj = model(start_encoding, end_encoding)
    jax.block_until_ready(traj)

    assert traj.shape == (batch, seq_len, output_size), traj.shape
    assert traj.dtype == jnp.float32

    ref = _reference_forward(model, start_encoding, end_encoding)
    np.testing.assert_allclose(np.asarray(traj), np.asarray(ref),
                               rtol=1e-2, atol=1e-2)

    print("KERNEL_OK")
</pallas_src>

<mosaic_0001>
module attributes {stable_mosaic.version = 11 : i64} {
  func.func @_bidir_traj_kernel(%arg0: i32, %arg1: memref<8x128xf32, #tpu.memory_space<vmem>>, %arg2: memref<8x128xf32, #tpu.memory_space<vmem>>, %arg3: memref<1x7xf32, #tpu.memory_space<smem>>, %arg4: memref<10x128xf32, #tpu.memory_space<vmem>>, %arg5: memref<128x128xbf16, #tpu.memory_space<vmem>>, %arg6: memref<128x128xbf16, #tpu.memory_space<vmem>>, %arg7: memref<128x128xbf16, #tpu.memory_space<vmem>>, %arg8: memref<128x128xbf16, #tpu.memory_space<vmem>>, %arg9: memref<128x128xbf16, #tpu.memory_space<vmem>>, %arg10: memref<128x128xbf16, #tpu.memory_space<vmem>>, %arg11: memref<128x128xbf16, #tpu.memory_space<vmem>>, %arg12: memref<128x128xbf16, #tpu.memory_space<vmem>>, %arg13: memref<128x128xbf16, #tpu.memory_space<vmem>>, %arg14: memref<128x128xbf16, #tpu.memory_space<vmem>>, %arg15: memref<8x128xf32, #tpu.memory_space<vmem>>) attributes {dimension_semantics = [#tpu.dimension_semantics<parallel>], iteration_bounds = array<i64: 1>, scalar_prefetch = 0 : i64, scratch_operands = 0 : i64, tpu.core_type = #tpu.core_type<tc>, window_params = [{transform_indices = @transform_0, window_bounds = array<i64: 8, 128>}, {transform_indices = @transform_1, window_bounds = array<i64: 8, 128>}, {transform_indices = @transform_2, window_bounds = array<i64: 1, 7>}, {pipeline_mode = #tpu.pipeline_mode<synchronous>, transform_indices = @transform_3, window_bounds = array<i64: 10, 128>}, {pipeline_mode = #tpu.pipeline_mode<synchronous>, transform_indices = @transform_4, window_bounds = array<i64: 128, 128>}, {pipeline_mode = #tpu.pipeline_mode<synchronous>, transform_indices = @transform_5, window_bounds = array<i64: 128, 128>}, {pipeline_mode = #tpu.pipeline_mode<synchronous>, transform_indices = @transform_6, window_bounds = array<i64: 128, 128>}, {pipeline_mode = #tpu.pipeline_mode<synchronous>, transform_indices = @transform_7, window_bounds = array<i64: 128, 128>}, {pipeline_mode = #tpu.pipeline_mode<synchronous>, transform_indices = @transform_8, window_bounds = array<i64: 128, 128>}, {pipeline_mode = #tpu.pipeline_mode<synchronous>, transform_indices = @transform_9, window_bounds = array<i64: 128, 128>}, {pipeline_mode = #tpu.pipeline_mode<synchronous>, transform_indices = @transform_10, window_bounds = array<i64: 128, 128>}, {pipeline_mode = #tpu.pipeline_mode<synchronous>, transform_indices = @transform_11, window_bounds = array<i64: 128, 128>}, {pipeline_mode = #tpu.pipeline_mode<synchronous>, transform_indices = @transform_12, window_bounds = array<i64: 128, 128>}, {pipeline_mode = #tpu.pipeline_mode<synchronous>, transform_indices = @transform_13, window_bounds = array<i64: 128, 128>}, {transform_indices = @transform_14, window_bounds = array<i64: 8, 128>}]} {
    %c0 = arith.constant 0 : index
    %c0_0 = arith.constant 0 : index
    %0 = vector.load %arg1[%c0, %c0_0] : memref<8x128xf32, #tpu.memory_space<vmem>>, vector<8x128xf32>
    %c0_1 = arith.constant 0 : index
    %c0_2 = arith.constant 0 : index
    %1 = vector.load %arg5[%c0_1, %c0_2] : memref<128x128xbf16, #tpu.memory_space<vmem>>, vector<128x128xbf16>
    %c0_3 = arith.constant 0 : index
    %c0_4 = arith.constant 0 : index
    %2 = vector.load %arg4[%c0_3, %c0_4] : memref<10x128xf32, #tpu.memory_space<vmem>>, vector<1x128xf32>
    %3 = arith.truncf %0 : vector<8x128xf32> to vector<8x128xbf16>
    %cst = arith.constant dense<0.000000e+00> : vector<8x128xf32>
    %4 = tpu.matmul %3, %1, %cst {dimension_numbers = #tpu.dot_dimension_numbers<[1], [0], [0], [1], [0, 0, 1, 1], [], []>} : vector<8x128xbf16>, vector<128x128xbf16>, vector<8x128xf32> -> vector<8x128xf32>
    %5 = vector.broadcast %2 : vector<1x128xf32> to vector<8x128xf32>
    %6 = arith.addf %4, %5 : vector<8x128xf32>
    %c0_5 = arith.constant 0 : index
    %c0_6 = arith.constant 0 : index
    %7 = memref.load %arg3[%c0_5, %c0_6] : memref<1x7xf32, #tpu.memory_space<smem>>
    %cst_7 = arith.constant 0.000000e+00 : f32
    %8 = vector.broadcast %cst_7 : f32 to vector<8x128xf32>
    %9 = arith.cmpf ogt, %6, %8 : vector<8x128xf32>
    %10 = vector.broadcast %7 : f32 to vector<8x128xf32>
    %11 = arith.mulf %10, %6 : vector<8x128xf32>
    %12 = arith.select %9, %6, %11 : vector<8x128xi1>, vector<8x128xf32>
    %c0_8 = arith.constant 0 : index
    %c0_9 = arith.constant 0 : index
    %13 = vector.load %arg6[%c0_8, %c0_9] : memref<128x128xbf16, #tpu.memory_space<vmem>>, vector<128x128xbf16>
    %c1 = arith.constant 1 : index
    %c0_10 = arith.constant 0 : index
    %14 = vector.load %arg4[%c1, %c0_10] : memref<10x128xf32, #tpu.memory_space<vmem>>, vector<1x128xf32>
    %15 = arith.truncf %12 : vector<8x128xf32> to vector<8x128xbf16>
    %cst_11 = arith.constant dense<0.000000e+00> : vector<8x128xf32>
    %16 = tpu.matmul %15, %13, %cst_11 {dimension_numbers = #tpu.dot_dimension_numbers<[1], [0], [0], [1], [0, 0, 1, 1], [], []>} : vector<8x128xbf16>, vector<128x128xbf16>, vector<8x128xf32> -> vector<8x128xf32>
    %17 = vector.broadcast %14 : vector<1x128xf32> to vector<8x128xf32>
    %18 = arith.addf %16, %17 : vector<8x128xf32>
    %c0_12 = arith.constant 0 : index
    %c1_13 = arith.constant 1 : index
    %19 = memref.load %arg3[%c0_12, %c1_13] : memref<1x7xf32, #tpu.memory_space<smem>>
    %cst_14 = arith.constant 0.000000e+00 : f32
    %20 = vector.broadcast %cst_14 : f32 to vector<8x128xf32>
    %21 = arith.cmpf ogt, %18, %20 : vector<8x128xf32>
    %22 = vector.broadcast %19 : f32 to vector<8x128xf32>
    %23 = arith.mulf %22, %18 : vector<8x128xf32>
    %24 = arith.select %21, %18, %23 : vector<8x128xi1>, vector<8x128xf32>
    %c0_15 = arith.constant 0 : index
    %c0_16 = arith.constant 0 : index
    %25 = vector.load %arg7[%c0_15, %c0_16] : memref<128x128xbf16, #tpu.memory_space<vmem>>, vector<128x128xbf16>
    %c2 = arith.constant 2 : index
    %c0_17 = arith.constant 0 : index
    %26 = vector.load %arg4[%c2, %c0_17] : memref<10x128xf32, #tpu.memory_space<vmem>>, vector<1x128xf32>
    %27 = arith.truncf %24 : vector<8x128xf32> to vector<8x128xbf16>
    %cst_18 = arith.constant dense<0.000000e+00> : vector<8x128xf32>
    %28 = tpu.matmul %27, %25, %cst_18 {dimension_numbers = #tpu.dot_dimension_numbers<[1], [0], [0], [1], [0, 0, 1, 1], [], []>} : vector<8x128xbf16>, vector<128x128xbf16>, vector<8x128xf32> -> vector<8x128xf32>
    %29 = vector.broadcast %26 : vector<1x128xf32> to vector<8x128xf32>
    %30 = arith.addf %28, %29 : vector<8x128xf32>
    %c0_19 = arith.constant 0 : index
    %c2_20 = arith.constant 2 : index
    %31 = memref.load %arg3[%c0_19, %c2_20] : memref<1x7xf32, #tpu.memory_space<smem>>
    %cst_21 = arith.constant 0.000000e+00 : f32
    %32 = vector.broadcast %cst_21 : f32 to vector<8x128xf32>
    %33 = arith.cmpf ogt, %30, %32 : vector<8x128xf32>
    %34 = vector.broadcast %31 : f32 to vector<8x128xf32>
    %35 = arith.mulf %34, %30 : vector<8x128xf32>
    %36 = arith.select %33, %30, %35 : vector<8x128xi1>, vector<8x128xf32>
    %c0_22 = arith.constant 0 : index
    %c0_23 = arith.constant 0 : index
    %37 = vector.load %arg8[%c0_22, %c0_23] : memref<128x128xbf16, #tpu.memory_space<vmem>>, vector<128x128xbf16>
    %c3 = arith.constant 3 : index
    %c0_24 = arith.constant 0 : index
    %38 = vector.load %arg4[%c3, %c0_24] : memref<10x128xf32, #tpu.memory_space<vmem>>, vector<1x128xf32>
    %39 = arith.truncf %36 : vector<8x128xf32> to vector<8x128xbf16>
    %cst_25 = arith.constant dense<0.000000e+00> : vector<8x128xf32>
    %40 = tpu.matmul %39, %37, %cst_25 {dimension_numbers = #tpu.dot_dimension_numbers<[1], [0], [0], [1], [0, 0, 1, 1], [], []>} : vector<8x128xbf16>, vector<128x128xbf16>, vector<8x128xf32> -> vector<8x128xf32>
    %41 = vector.broadcast %38 : vector<1x128xf32> to vector<8x128xf32>
    %42 = arith.addf %40, %41 : vector<8x128xf32>
    %c0_26 = arith.constant 0 : index
    %c0_27 = arith.constant 0 : index
    %43 = vector.load %arg2[%c0_26, %c0_27] : memref<8x128xf32, #tpu.memory_space<vmem>>, vector<8x128xf32>
    %c0_28 = arith.constant 0 : index
    %c0_29 = arith.constant 0 : index
    %44 = vector.load %arg9[%c0_28, %c0_29] : memref<128x128xbf16, #tpu.memory_space<vmem>>, vector<128x128xbf16>
    %c4 = arith.constant 4 : index
    %c0_30 = arith.constant 0 : index
    %45 = vector.load %arg4[%c4, %c0_30] : memref<10x128xf32, #tpu.memory_space<vmem>>, vector<1x128xf32>
    %46 = arith.truncf %43 : vector<8x128xf32> to vector<8x128xbf16>
    %cst_31 = arith.constant dense<0.000000e+00> : vector<8x128xf32>
    %47 = tpu.matmul %46, %44, %cst_31 {dimension_numbers = #tpu.dot_dimension_numbers<[1], [0], [0], [1], [0, 0, 1, 1], [], []>} : vector<8x128xbf16>, vector<128x128xbf16>, vector<8x128xf32> -> vector<8x128xf32>
    %48 = vector.broadcast %45 : vector<1x128xf32> to vector<8x128xf32>
    %49 = arith.addf %47, %48 : vector<8x128xf32>
    %c0_32 = arith.constant 0 : index
    %c3_33 = arith.constant 3 : index
    %50 = memref.load %arg3[%c0_32, %c3_33] : memref<1x7xf32, #tpu.memory_space<smem>>
    %cst_34 = arith.constant 0.000000e+00 : f32
    %51 = vector.broadcast %cst_34 : f32 to vector<8x128xf32>
    %52 = arith.cmpf ogt, %49, %51 : vector<8x128xf32>
    %53 = vector.broadcast %50 : f32 to vector<8x128xf32>
    %54 = arith.mulf %53, %49 : vector<8x128xf32>
    %55 = arith.select %52, %49, %54 : vector<8x128xi1>, vector<8x128xf32>
    %c0_35 = arith.constant 0 : index
    %c0_36 = arith.constant 0 : index
    %56 = vector.load %arg10[%c0_35, %c0_36] : memref<128x128xbf16, #tpu.memory_space<vmem>>, vector<128x128xbf16>
    %c5 = arith.constant 5 : index
    %c0_37 = arith.constant 0 : index
    %57 = vector.load %arg4[%c5, %c0_37] : memref<10x128xf32, #tpu.memory_space<vmem>>, vector<1x128xf32>
    %58 = arith.truncf %55 : vector<8x128xf32> to vector<8x128xbf16>
    %cst_38 = arith.constant dense<0.000000e+00> : vector<8x128xf32>
    %59 = tpu.matmul %58, %56, %cst_38 {dimension_numbers = #tpu.dot_dimension_numbers<[1], [0], [0], [1], [0, 0, 1, 1], [], []>} : vector<8x128xbf16>, vector<128x128xbf16>, vector<8x128xf32> -> vector<8x128xf32>
    %60 = vector.broadcast %57 : vector<1x128xf32> to vector<8x128xf32>
    %61 = arith.addf %59, %60 : vector<8x128xf32>
    %c0_39 = arith.constant 0 : index
    %c4_40 = arith.constant 4 : index
    %62 = memref.load %arg3[%c0_39, %c4_40] : memref<1x7xf32, #tpu.memory_space<smem>>
    %cst_41 = arith.constant 0.000000e+00 : f32
    %63 = vector.broadcast %cst_41 : f32 to vector<8x128xf32>
    %64 = arith.cmpf ogt, %61, %63 : vector<8x128xf32>
    %65 = vector.broadcast %62 : f32 to vector<8x128xf32>
    %66 = arith.mulf %65, %61 : vector<8x128xf32>
    %67 = arith.select %64, %61, %66 : vector<8x128xi1>, vector<8x128xf32>
    %c0_42 = arith.constant 0 : index
    %c0_43 = arith.constant 0 : index
    %68 = vector.load %arg11[%c0_42, %c0_43] : memref<128x128xbf16, #tpu.memory_space<vmem>>, vector<128x128xbf16>
    %c6 = arith.constant 6 : index
    %c0_44 = arith.constant 0 : index
    %69 = vector.load %arg4[%c6, %c0_44] : memref<10x128xf32, #tpu.memory_space<vmem>>, vector<1x128xf32>
    %70 = arith.truncf %67 : vector<8x128xf32> to vector<8x128xbf16>
    %cst_45 = arith.constant dense<0.000000e+00> : vector<8x128xf32>
    %71 = tpu.matmul %70, %68, %cst_45 {dimension_numbers = #tpu.dot_dimension_numbers<[1], [0], [0], [1], [0, 0, 1, 1], [], []>} : vector<8x128xbf16>, vector<128x128xbf16>, vector<8x128xf32> -> vector<8x128xf32>
    %72 = vector.broadcast %69 : vector<1x128xf32> to vector<8x128xf32>
    %73 = arith.addf %71, %72 : vector<8x128xf32>
    %c0_46 = arith.constant 0 : index
    %c5_47 = arith.constant 5 : index
    %74 = memref.load %arg3[%c0_46, %c5_47] : memref<1x7xf32, #tpu.memory_space<smem>>
    %cst_48 = arith.constant 0.000000e+00 : f32
    %75 = vector.broadcast %cst_48 : f32 to vector<8x128xf32>
    %76 = arith.cmpf ogt, %73, %75 : vector<8x128xf32>
    %77 = vector.broadcast %74 : f32 to vector<8x128xf32>
    %78 = arith.mulf %77, %73 : vector<8x128xf32>
    %79 = arith.select %76, %73, %78 : vector<8x128xi1>, vector<8x128xf32>
    %c0_49 = arith.constant 0 : index
    %c0_50 = arith.constant 0 : index
    %80 = vector.load %arg12[%c0_49, %c0_50] : memref<128x128xbf16, #tpu.memory_space<vmem>>, vector<128x128xbf16>
    %c7 = arith.constant 7 : index
    %c0_51 = arith.constant 0 : index
    %81 = vector.load %arg4[%c7, %c0_51] : memref<10x128xf32, #tpu.memory_space<vmem>>, vector<1x128xf32>
    %82 = arith.truncf %79 : vector<8x128xf32> to vector<8x128xbf16>
    %cst_52 = arith.constant dense<0.000000e+00> : vector<8x128xf32>
    %83 = tpu.matmul %82, %80, %cst_52 {dimension_numbers = #tpu.dot_dimension_numbers<[1], [0], [0], [1], [0, 0, 1, 1], [], []>} : vector<8x128xbf16>, vector<128x128xbf16>, vector<8x128xf32> -> vector<8x128xf32>
    %84 = vector.broadcast %81 : vector<1x128xf32> to vector<8x128xf32>
    %85 = arith.addf %83, %84 : vector<8x128xf32>
    %86 = vector.extract_strided_slice %42 {offsets = [0, 24], sizes = [8, 8], strides = [1, 1]} : vector<8x128xf32> to vector<8x8xf32>
    %87 = vector.extract_strided_slice %85 {offsets = [0, 24], sizes = [8, 8], strides = [1, 1]} : vector<8x128xf32> to vector<8x8xf32>
    %cst_53 = arith.constant 0.000000e+00 : f32
    %88 = vector.broadcast %cst_53 : f32 to vector<8x112xf32>
    %89 = tpu.concatenate %86, %87, %88 in 1 : vector<8x8xf32>, vector<8x8xf32>, vector<8x112xf32> -> vector<8x128xf32>
    %c0_54 = arith.constant 0 : index
    %c0_55 = arith.constant 0 : index
    %90 = vector.load %arg13[%c0_54, %c0_55] : memref<128x128xbf16, #tpu.memory_space<vmem>>, vector<128x128xbf16>
    %c8 = arith.constant 8 : index
    %c0_56 = arith.constant 0 : index
    %91 = vector.load %arg4[%c8, %c0_56] : memref<10x128xf32, #tpu.memory_space<vmem>>, vector<1x128xf32>
    %92 = arith.truncf %89 : vector<8x128xf32> to vector<8x128xbf16>
    %cst_57 = arith.constant dense<0.000000e+00> : vector<8x128xf32>
    %93 = tpu.matmul %92, %90, %cst_57 {dimension_numbers = #tpu.dot_dimension_numbers<[1], [0], [0], [1], [0, 0, 1, 1], [], []>} : vector<8x128xbf16>, vector<128x128xbf16>, vector<8x128xf32> -> vector<8x128xf32>
    %94 = vector.broadcast %91 : vector<1x128xf32> to vector<8x128xf32>
    %95 = arith.addf %93, %94 : vector<8x128xf32>
    %c0_58 = arith.constant 0 : index
    %c6_59 = arith.constant 6 : index
    %96 = memref.load %arg3[%c0_58, %c6_59] : memref<1x7xf32, #tpu.memory_space<smem>>
    %cst_60 = arith.constant 0.000000e+00 : f32
    %97 = vector.broadcast %cst_60 : f32 to vector<8x128xf32>
    %98 = arith.cmpf ogt, %95, %97 : vector<8x128xf32>
    %99 = vector.broadcast %96 : f32 to vector<8x128xf32>
    %100 = arith.mulf %99, %95 : vector<8x128xf32>
    %101 = arith.select %98, %95, %100 : vector<8x128xi1>, vector<8x128xf32>
    %c0_61 = arith.constant 0 : index
    %c0_62 = arith.constant 0 : index
    %102 = vector.load %arg14[%c0_61, %c0_62] : memref<128x128xbf16, #tpu.memory_space<vmem>>, vector<128x128xbf16>
    %c9 = arith.constant 9 : index
    %c0_63 = arith.constant 0 : index
    %103 = vector.load %arg4[%c9, %c0_63] : memref<10x128xf32, #tpu.memory_space<vmem>>, vector<1x128xf32>
    %104 = arith.truncf %101 : vector<8x128xf32> to vector<8x128xbf16>
    %cst_64 = arith.constant dense<0.000000e+00> : vector<8x128xf32>
    %105 = tpu.matmul %104, %102, %cst_64 {dimension_numbers = #tpu.dot_dimension_numbers<[1], [0], [0], [1], [0, 0, 1, 1], [], []>} : vector<8x128xbf16>, vector<128x128xbf16>, vector<8x128xf32> -> vector<8x128xf32>
    %106 = vector.broadcast %103 : vector<1x128xf32> to vector<8x128xf32>
    %107 = arith.addf %105, %106 : vector<8x128xf32>
    %108 = vector.extract_strided_slice %42 {offsets = [0, 0], sizes = [8, 24], strides = [1, 1]} : vector<8x128xf32> to vector<8x24xf32>
    %109 = vector.extract_strided_slice %107 {offsets = [0, 0], sizes = [8, 8], strides = [1, 1]} : vector<8x128xf32> to vector<8x8xf32>
    %110 = vector.extract_strided_slice %85 {offsets = [0, 16], sizes = [8, 8], strides = [1, 1]} : vector<8x128xf32> to vector<8x8xf32>
    %111 = vector.extract_strided_slice %85 {offsets = [0, 8], sizes = [8, 8], strides = [1, 1]} : vector<8x128xf32> to vector<8x8xf32>
    %112 = vector.extract_strided_slice %85 {offsets = [0, 0], sizes = [8, 8], strides = [1, 1]} : vector<8x128xf32> to vector<8x8xf32>
    %113 = vector.extract_strided_slice %85 {offsets = [0, 0], sizes = [8, 8], strides = [1, 1]} : vector<8x128xf32> to vector<8x8xf32>
    %cst_65 = arith.constant 0.000000e+00 : f32
    %114 = vector.broadcast %cst_65 : f32 to vector<8x64xf32>
    %115 = tpu.concatenate %108, %109, %110, %111, %112, %113, %114 in 1 : vector<8x24xf32>, vector<8x8xf32>, vector<8x8xf32>, vector<8x8xf32>, vector<8x8xf32>, vector<8x8xf32>, vector<8x64xf32> -> vector<8x128xf32>
    %c0_66 = arith.constant 0 : index
    %c0_67 = arith.constant 0 : index
    %116 = vector.load %arg15[%c0_66, %c0_67] : memref<8x128xf32, #tpu.memory_space<vmem>>, vector<8x128xf32>
    tpu.vector_store %arg15[%c0_66, %c0_67], %115 {strides = array<i32>} : memref<8x128xf32, #tpu.memory_space<vmem>>, vector<8x128xf32>,
    return
  }
  func.func @transform_0(%arg0: i32) -> (i32, i32) {
    %c0_i32 = arith.constant 0 : i32
    %c0_i32_0 = arith.constant 0 : i32
    return %arg0, %c0_i32 : i32, i32
  }
  func.func @transform_1(%arg0: i32) -> (i32, i32) {
    %c0_i32 = arith.constant 0 : i32
    %c0_i32_0 = arith.constant 0 : i32
    return %arg0, %c0_i32 : i32, i32
  }
  func.func @transform_2(%arg0: i32) -> (i32, i32) {
    %c0_i32 = arith.constant 0 : i32
    %c0_i32_0 = arith.constant 0 : i32
    %c0_i32_1 = arith.constant 0 : i32
    return %c0_i32, %c0_i32_0 : i32, i32
  }
  func.func @transform_3(%arg0: i32) -> (i32, i32) {
    %c0_i32 = arith.constant 0 : i32
    %c0_i32_0 = arith.constant 0 : i32
    %c0_i32_1 = arith.constant 0 : i32
    return %c0_i32, %c0_i32_0 : i32, i32
  }
  func.func @transform_4(%arg0: i32) -> (i32, i32) {
    %c0_i32 = arith.constant 0 : i32
    %c0_i32_0 = arith.constant 0 : i32
    %c0_i32_1 = arith.constant 0 : i32
    return %c0_i32, %c0_i32_0 : i32, i32
  }
  func.func @transform_5(%arg0: i32) -> (i32, i32) {
    %c0_i32 = arith.constant 0 : i32
    %c0_i32_0 = arith.constant 0 : i32
    %c0_i32_1 = arith.constant 0 : i32
    return %c0_i32, %c0_i32_0 : i32, i32
  }
  func.func @transform_6(%arg0: i32) -> (i32, i32) {
    %c0_i32 = arith.constant 0 : i32
    %c0_i32_0 = arith.constant 0 : i32
    %c0_i32_1 = arith.constant 0 : i32
    return %c0_i32, %c0_i32_0 : i32, i32
  }
  func.func @transform_7(%arg0: i32) -> (i32, i32) {
    %c0_i32 = arith.constant 0 : i32
    %c0_i32_0 = arith.constant 0 : i32
    %c0_i32_1 = arith.constant 0 : i32
    return %c0_i32, %c0_i32_0 : i32, i32
  }
  func.func @transform_8(%arg0: i32) -> (i32, i32) {
    %c0_i32 = arith.constant 0 : i32
    %c0_i32_0 = arith.constant 0 : i32
    %c0_i32_1 = arith.constant 0 : i32
    return %c0_i32, %c0_i32_0 : i32, i32
  }
  func.func @transform_9(%arg0: i32) -> (i32, i32) {
    %c0_i32 = arith.constant 0 : i32
    %c0_i32_0 = arith.constant 0 : i32
    %c0_i32_1 = arith.constant 0 : i32
    return %c0_i32, %c0_i32_0 : i32, i32
  }
  func.func @transform_10(%arg0: i32) -> (i32, i32) {
    %c0_i32 = arith.constant 0 : i32
    %c0_i32_0 = arith.constant 0 : i32
    %c0_i32_1 = arith.constant 0 : i32
    return %c0_i32, %c0_i32_0 : i32, i32
  }
  func.func @transform_11(%arg0: i32) -> (i32, i32) {
    %c0_i32 = arith.constant 0 : i32
    %c0_i32_0 = arith.constant 0 : i32
    %c0_i32_1 = arith.constant 0 : i32
    return %c0_i32, %c0_i32_0 : i32, i32
  }
  func.func @transform_12(%arg0: i32) -> (i32, i32) {
    %c0_i32 = arith.constant 0 : i32
    %c0_i32_0 = arith.constant 0 : i32
    %c0_i32_1 = arith.constant 0 : i32
    return %c0_i32, %c0_i32_0 : i32, i32
  }
  func.func @transform_13(%arg0: i32) -> (i32, i32) {
    %c0_i32 = arith.constant 0 : i32
    %c0_i32_0 = arith.constant 0 : i32
    %c0_i32_1 = arith.constant 0 : i32
    return %c0_i32, %c0_i32_0 : i32, i32
  }
  func.func @transform_14(%arg0: i32) -> (i32, i32) {
    %c0_i32 = arith.constant 0 : i32
    %c0_i32_0 = arith.constant 0 : i32
    return %arg0, %c0_i32 : i32, i32
  }
}

</mosaic_0001>

<bundles_post_ra>
// kernel: tpu_custom_call.1
= control target key start
LH: loop header
LB: loop body
LE: loop exit
PB: predicated region body
PF: predicated region fallthrough
CT: control target
= control target key end

     0   :  { %19 = vsyncpa [#allocation3], 0  ;;  %s2525_s0 = inlined_call_operand.hbm [shape: f32[8,128], index: 0, kind: input, shape index: {}]   ;;  %s2526_s1 = inlined_call_operand.hbm [shape: f32[8,128], index: 1, kind: input, shape index: {}]   ;;  %s2527_s2 = inlined_call_operand.vmem [shape: f32[1,7], index: 2, kind: input, shape index: {}]   ;;  %s2528_s3 = inlined_call_operand.hbm [shape: f32[10,128], index: 3, kind: input, shape index: {}]   ;;  %s2529_s4 = inlined_call_operand.hbm [shape: bf16[128,128], index: 4, kind: input, shape index: {}]   ;;  %s2530_s5 = inlined_call_operand.hbm [shape: bf16[128,128], index: 5, kind: input, shape index: {}]   ;;  %s2531_s6 = inlined_call_operand.hbm [shape: bf16[128,128], index: 6, kind: input, shape index: {}]   ;;  %s2532_s7 = inlined_call_operand.hbm [shape: bf16[128,128], index: 7, kind: input, shape index: {}]   ;;  %s2533_s8 = inlined_call_operand.hbm [shape: bf16[128,128], index: 8, kind: input, shape index: {}]   ;;  %s2534_s9 = inlined_call_operand.hbm [shape: bf16[128,128], index: 9, kind: input, shape index: {}]   ;;  %s2535_s10 = inlined_call_operand.hbm [shape: bf16[128,128], index: 10, kind: input, shape index: {}]   ;;  %s2536_s11 = inlined_call_operand.hbm [shape: bf16[128,128], index: 11, kind: input, shape index: {}]   ;;  %s2537_s12 = inlined_call_operand.hbm [shape: bf16[128,128], index: 12, kind: input, shape index: {}]   ;;  %s2538_s13 = inlined_call_operand.hbm [shape: bf16[128,128], index: 13, kind: input, shape index: {}]   ;;  %s2539_s14 = inlined_call_operand.hbm [shape: f32[8,128], index: 14, kind: output, shape index: {}]  }
   0x1   :  { %20 = vsyncpa [#allocation7], 0 }
   0x2   :  { %21 = vsyncpa [#allocation5], 0 }
   0x3   :  { %22 = vsyncpa [#allocation11], 0 }
   0x4   :  { %23 = vsyncpa [#allocation14], 0 }
   0x5   :  { %24 = vsyncpa [#allocation17], 0 }
   0x6   :  { %25 = vsyncpa [#allocation20], 0 }
   0x7   :  { %26 = vsyncpa [#allocation23], 0 }
   0x8   :  { %27 = vsyncpa [#allocation4], 0  ;;  %s2243_s29 = smov [#allocation6]   ;;  %s2244_s15 = smov [#allocation10]  }
   0x9   :  { %s44_s30 = sshll.u32 %s2243_s29, 4  ;;  %s75_s16 = sshll.u32 %s2244_s15, 4  ;;  %s45_s30 = int_to_ptr.vmem [resolvable:$true] %s44_s30  ;;  %s76_s16 = int_to_ptr.vmem [resolvable:$true] %s75_s16 }
   0xa   :  { %s1939_s17 = scalar_lea.vmem %s45_s30, 128  ;;  %p1944_p1 = scmp.lt.s32.totalorder %s45_s30, %s45_s30 }
   0xb   :  { %p1940_p0 = scmp.ne.s32.totalorder %s45_s30, %s1939_s17  ;;  %p1945_p2 = scmp.lt.s32.totalorder %s1939_s17, %s1939_s17 }
   0xd   :  { %p1946_p3 = por %p1945_p2, %p1944_p1 }
   0xf   :  { %p1947_p4 = pnand %p1946_p3, %p1940_p0 }
  0x11   :  { %1950 = shalt.err (!%p1947_p4)
}
  0x12   :  { %47 = dma.hbm_to_vmem [thread:$0]  %s2526_s1, 128, %s45_s30, [#allocation7]  }
  0x13   :  { %s1959_s20 = scalar_lea.vmem %s76_s16, 1024  ;;  %p1964_p6 = scmp.lt.s32.totalorder %s76_s16, %s76_s16 }
  0x14   :  { %p1960_p5 = scmp.ne.s32.totalorder %s76_s16, %s1959_s20  ;;  %p1965_p7 = scmp.lt.s32.totalorder %s1959_s20, %s1959_s20 }
  0x16   :  { %p1966_p8 = por %p1965_p7, %p1964_p6 }
  0x18   :  { %p1967_p9 = pnand %p1966_p8, %p1960_p5 }
  0x1a   :  { %1970 = shalt.err (!%p1967_p9)
}
  0x1b   :  { %s2245_s21 = smov 64   ;;  %s2246_s22 = smov 4  }
  0x1c   :  { %81 = dma.hbm_to_vmem [thread:$0]  %s2529_s4, 1024, %s76_s16, [#allocation11], %s2245_s21, %s2245_s21, %s2246_s22  }
  0x1d   :  { %s2247_s25 = smov [#allocation13]   ;;  %s2248_s27 = smov [#allocation16]  }
  0x1e   :  { %s99_s26 = sshll.u32 %s2247_s25, 4  ;;  %s123_s1 = sshll.u32 %s2248_s27, 4  ;;  %s100_s26 = int_to_ptr.vmem [resolvable:$true] %s99_s26  ;;  %s124_s1 = int_to_ptr.vmem [resolvable:$true] %s123_s1 }
  0x1f   :  { %s1979_s28 = scalar_lea.vmem %s100_s26, 1024  ;;  %p1984_p11 = scmp.lt.s32.totalorder %s100_s26, %s100_s26 }
  0x20   :  { %p1980_p10 = scmp.ne.s32.totalorder %s100_s26, %s1979_s28  ;;  %p1985_p12 = scmp.lt.s32.totalorder %s1979_s28, %s1979_s28 }
  0x22   :  { %p1986_p13 = por %p1985_p12, %p1984_p11 }
  0x24   :  { %p1987_p0 = pnand %p1986_p13, %p1980_p10 }
  0x26   :  { %1990 = shalt.err (!%p1987_p0)
}
  0x27   :  { %105 = dma.hbm_to_vmem [thread:$0]  %s2531_s6, 1024, %s100_s26, [#allocation14], %s2245_s21, %s2245_s21, %s2246_s22  }
  0x28   :  { %s1999_s4 = scalar_lea.vmem %s124_s1, 1024  ;;  %p2004_p2 = scmp.lt.s32.totalorder %s124_s1, %s124_s1 }
  0x29   :  { %p2000_p1 = scmp.ne.s32.totalorder %s124_s1, %s1999_s4  ;;  %p2005_p3 = scmp.lt.s32.totalorder %s1999_s4, %s1999_s4 }
  0x2b   :  { %p2006_p4 = por %p2005_p3, %p2004_p2 }
  0x2d   :  { %p2007_p5 = pnand %p2006_p4, %p2000_p1 }
  0x2f   :  { %2010 = shalt.err (!%p2007_p5)
}
  0x30   :  { %129 = dma.hbm_to_vmem [thread:$0]  %s2533_s8, 1024, %s124_s1, [#allocation17], %s2245_s21, %s2245_s21, %s2246_s22  }
  0x31   :  { %s2249_s17 = smov [#allocation19]   ;;  %s2250_s19 = smov [#allocation22]  }
  0x32   :  { %s147_s18 = sshll.u32 %s2249_s17, 4  ;;  %s171_s20 = sshll.u32 %s2250_s19, 4  ;;  %s148_s18 = int_to_ptr.vmem [resolvable:$true] %s147_s18  ;;  %s172_s20 = int_to_ptr.vmem [resolvable:$true] %s171_s20 }
  0x33   :  { %s2019_s6 = scalar_lea.vmem %s148_s18, 1024  ;;  %p2024_p7 = scmp.lt.s32.totalorder %s148_s18, %s148_s18 }
  0x34   :  { %p2020_p6 = scmp.ne.s32.totalorder %s148_s18, %s2019_s6  ;;  %p2025_p8 = scmp.lt.s32.totalorder %s2019_s6, %s2019_s6 }
  0x36   :  { %p2026_p9 = por %p2025_p8, %p2024_p7 }
  0x38   :  { %p2027_p10 = pnand %p2026_p9, %p2020_p6 }
  0x3a   :  { %2030 = shalt.err (!%p2027_p10)
}
  0x3b   :  { %153 = dma.hbm_to_vmem [thread:$0]  %s2535_s10, 1024, %s148_s18, [#allocation20], %s2245_s21, %s2245_s21, %s2246_s22  }
  0x3c   :  { %s2039_s8 = scalar_lea.vmem %s172_s20, 1024  ;;  %p2044_p12 = scmp.lt.s32.totalorder %s172_s20, %s172_s20 }
  0x3d   :  { %p2040_p11 = scmp.ne.s32.totalorder %s172_s20, %s2039_s8  ;;  %p2045_p13 = scmp.lt.s32.totalorder %s2039_s8, %s2039_s8 }
  0x3f   :  { %p2046_p0 = por %p2045_p13, %p2044_p12 }
  0x41   :  { %p2047_p1 = pnand %p2046_p0, %p2040_p11 }
  0x43   :  { %2050 = shalt.err (!%p2047_p1)
}
  0x44   :  { %177 = dma.hbm_to_vmem [thread:$0]  %s2537_s12, 1024, %s172_s20, [#allocation23], %s2245_s21, %s2245_s21, %s2246_s22  }
  0x45   :  { %s54_s28 = sshll.u32 %s2527_s2, 4  ;;  %s2251_s29 = smov [#allocation2]   ;;  %s55_s28 = int_to_ptr.vmem [resolvable:$true] %s54_s28 }
  0x46   :  { %s34_s10 = sshll.u32 %s2251_s29, 4  ;;  %s35_s10 = int_to_ptr.vmem [resolvable:$true] %s34_s10 }
  0x47   :  { %s2059_s30 = scalar_lea.vmem %s35_s10, 128  ;;  %p2064_p3 = scmp.lt.s32.totalorder %s35_s10, %s35_s10 }
  0x48   :  { %p2060_p2 = scmp.ne.s32.totalorder %s35_s10, %s2059_s30  ;;  %p2065_p4 = scmp.lt.s32.totalorder %s2059_s30, %s2059_s30 }
  0x4a   :  { %p2066_p5 = por %p2065_p4, %p2064_p3 }
  0x4c   :  { %p2067_p6 = pnand %p2066_p5, %p2060_p2 }
  0x4e   :  { %2070 = shalt.err (!%p2067_p6)
}
  0x4f   :  { %37 = dma.hbm_to_vmem [thread:$0]  %s2525_s0, 128, %s35_s10, [#allocation3]  }
  0x50   :  { %s2071_s12 = scalar_lea.vmem %s55_s28, 16  ;;  %p2076_p8 = scmp.lt.s32.totalorder %s55_s28, %s55_s28 }
  0x51   :  { %p2072_p7 = scmp.ne.s32.totalorder %s55_s28, %s2071_s12  ;;  %p2077_p9 = scmp.lt.s32.totalorder %s2071_s12, %s2071_s12 }
  0x53   :  { %p2078_p10 = por %p2077_p9, %p2076_p8 }
  0x55   :  { %p2079_p11 = pnand %p2078_p10, %p2072_p7 }
  0x57   :  { %2082 = shalt.err (!%p2079_p11)
}
  0x58   :  { %s2252_s2 = smov [#allocation8]   ;;  %s2253_s16 = smov [#allocation9]  }
  0x59   :  { %57 = dma.vmem_to_smem %s55_s28, 16, %s2252_s2, [#allocation5]  }
  0x5a   :  { %s63_s17 = sshll.u32 %s2253_s16, 4  ;;  %s64_s17 = int_to_ptr.vmem [resolvable:$true] %s63_s17 }
  0x5b   :  { %s2091_s18 = scalar_lea.vmem %s64_s17, 256  ;;  %p2096_p13 = scmp.lt.s32.totalorder %s64_s17, %s64_s17 }
  0x5c   :  { %p2092_p12 = scmp.ne.s32.totalorder %s64_s17, %s2091_s18  ;;  %p2097_p0 = scmp.lt.s32.totalorder %s2091_s18, %s2091_s18 }
  0x5e   :  { %p2098_p1 = por %p2097_p0, %p2096_p13 }
  0x60   :  { %p2099_p2 = pnand %p2098_p1, %p2092_p12 }
  0x62   :  { %2102 = shalt.err (!%p2099_p2)
}
  0x63   :  { %s2254_s0 = smov 128   ;;  %s2255_s19 = smov 8  }
  0x64   :  { %69 = dma.hbm_to_vmem [thread:$0]  %s2528_s3, 256, %s64_s17, [#allocation7], %s2254_s0, %s2254_s0, %s2255_s19  }
  0x65   :  { %s2256_s23 = smov [#allocation12]   ;;  %s2257_s8 = smov [#allocation15]  }
  0x66   :  { %s87_s24 = sshll.u32 %s2256_s23, 4  ;;  %s111_s25 = sshll.u32 %s2257_s8, 4  ;;  %s88_s24 = int_to_ptr.vmem [resolvable:$true] %s87_s24  ;;  %s112_s25 = int_to_ptr.vmem [resolvable:$true] %s111_s25 }
  0x67   :  { %s2111_s26 = scalar_lea.vmem %s88_s24, 1024  ;;  %p2116_p4 = scmp.lt.s32.totalorder %s88_s24, %s88_s24 }
  0x68   :  { %p2112_p3 = scmp.ne.s32.totalorder %s88_s24, %s2111_s26  ;;  %p2117_p5 = scmp.lt.s32.totalorder %s2111_s26, %s2111_s26 }
  0x6a   :  { %p2118_p6 = por %p2117_p5, %p2116_p4 }
  0x6c   :  { %p2119_p7 = pnand %p2118_p6, %p2112_p3 }
  0x6e   :  { %2122 = shalt.err (!%p2119_p7)
}
  0x6f   :  { %93 = dma.hbm_to_vmem [thread:$0]  %s2530_s5, 1024, %s88_s24, [#allocation11], %s2245_s21, %s2245_s21, %s2246_s22  }
  0x70   :  { %s2131_s3 = scalar_lea.vmem %s112_s25, 1024  ;;  %p2136_p9 = scmp.lt.s32.totalorder %s112_s25, %s112_s25 }
  0x71   :  { %p2132_p8 = scmp.ne.s32.totalorder %s112_s25, %s2131_s3  ;;  %p2137_p10 = scmp.lt.s32.totalorder %s2131_s3, %s2131_s3 }
  0x73   :  { %p2138_p11 = por %p2137_p10, %p2136_p9 }
  0x75   :  { %p2139_p12 = pnand %p2138_p11, %p2132_p8 }
  0x77   :  { %2142 = shalt.err (!%p2139_p12)
}
  0x78   :  { %117 = dma.hbm_to_vmem [thread:$0]  %s2532_s7, 1024, %s112_s25, [#allocation14], %s2245_s21, %s2245_s21, %s2246_s22  }
  0x79   :  { %s2258_s10 = smov [#allocation18]   ;;  %s2259_s4 = smov [#allocation21]  }
  0x7a   :  { %s135_s30 = sshll.u32 %s2258_s10, 4  ;;  %s159_s5 = sshll.u32 %s2259_s4, 4  ;;  %s136_s30 = int_to_ptr.vmem [resolvable:$true] %s135_s30  ;;  %s160_s5 = int_to_ptr.vmem [resolvable:$true] %s159_s5 }
  0x7b   :  { %s2151_s15 = scalar_lea.vmem %s136_s30, 1024  ;;  %p2156_p0 = scmp.lt.s32.totalorder %s136_s30, %s136_s30 }
  0x7c   :  { %p2152_p13 = scmp.ne.s32.totalorder %s136_s30, %s2151_s15  ;;  %p2157_p1 = scmp.lt.s32.totalorder %s2151_s15, %s2151_s15 }
  0x7e   :  { %p2158_p2 = por %p2157_p1, %p2156_p0 }
  0x80   :  { %p2159_p3 = pnand %p2158_p2, %p2152_p13 }
  0x82   :  { %2162 = shalt.err (!%p2159_p3)
}
  0x83   :  { %141 = dma.hbm_to_vmem [thread:$0]  %s2534_s9, 1024, %s136_s30, [#allocation17], %s2245_s21, %s2245_s21, %s2246_s22  }
  0x84   :  { %s2171_s7 = scalar_lea.vmem %s160_s5, 1024  ;;  %p2176_p5 = scmp.lt.s32.totalorder %s160_s5, %s160_s5 }
  0x85   :  { %p2172_p4 = scmp.ne.s32.totalorder %s160_s5, %s2171_s7  ;;  %p2177_p6 = scmp.lt.s32.totalorder %s2171_s7, %s2171_s7 }
  0x87   :  { %p2178_p7 = por %p2177_p6, %p2176_p5 }
  0x89   :  { %p2179_p8 = pnand %p2178_p7, %p2172_p4 }
  0x8b   :  { %2182 = shalt.err (!%p2179_p8)
}
  0x8c   :  { %165 = dma.hbm_to_vmem [thread:$0]  %s2536_s11, 1024, %s160_s5, [#allocation20], %s2245_s21, %s2245_s21, %s2246_s22  }
  0x8d   :  { %s2260_s18 = smov [#allocation24]  }
  0x8e   :  { %s183_s0 = sshll.u32 %s2260_s18, 4  ;;  %s184_s0 = int_to_ptr.vmem [resolvable:$true] %s183_s0 }
  0x8f   :  { %s2191_s19 = scalar_lea.vmem %s184_s0, 1024  ;;  %p2196_p10 = scmp.lt.s32.totalorder %s184_s0, %s184_s0 }
  0x90   :  { %p2192_p9 = scmp.ne.s32.totalorder %s184_s0, %s2191_s19  ;;  %p2197_p11 = scmp.lt.s32.totalorder %s2191_s19, %s2191_s19 }
  0x92   :  { %p2198_p12 = por %p2197_p11, %p2196_p10 }
  0x94   :  { %p2199_p13 = pnand %p2198_p12, %p2192_p9 }
  0x96   :  { %2202 = shalt.err (!%p2199_p13)
}
  0x97   :  { %189 = dma.hbm_to_vmem [thread:$0]  %s2538_s13, 1024, %s184_s0, [#allocation23], %s2245_s21, %s2245_s21, %s2246_s22  }
  0x98   :  { %2223 = dma.done.wait [#allocation3], 128  }
  0x99   :  { %2224 = vsyncadd [#allocation3], 4294967168 }
  0x9a   :  { %2225 = dma.done.wait [#allocation7], 128  }
  0x9b   :  { %2226 = vsyncadd [#allocation7], 4294967168 }
  0x9c   :  { %2227 = dma.done.wait [#allocation5], 16  }
  0x9d   :  { %2228 = vsyncadd [#allocation5], 4294967280 }
  0x9e   :  { %2229 = dma.done.wait [#allocation7], 256  }
  0x9f   :  { %2230 = vsyncadd [#allocation7], 4294967040 }
  0xa0   :  { %2231 = dma.done.wait [#allocation11], 2048  }
  0xa1   :  { %2232 = vsyncadd [#allocation11], 4294965248 }
  0xa2   :  { %2233 = dma.done.wait [#allocation14], 2048  }
  0xa3   :  { %2234 = vsyncadd [#allocation14], 4294965248 }
  0xa4   :  { %2235 = dma.done.wait [#allocation17], 2048  }
  0xa5   :  { %2236 = vsyncadd [#allocation17], 4294965248 }
  0xa6   :  { %2237 = dma.done.wait [#allocation20], 2048  }
  0xa7   :  { %2238 = vsyncadd [#allocation20], 4294965248 }
  0xa8   :  { %2239 = dma.done.wait [#allocation23], 2048  }
  0xa9   :  { %2240 = vsyncadd [#allocation23], 4294965248 }
  0xaa   :  { %232 = sfence }
  0xab   :  { %v1851_v0 = vld [vmem:[#allocation10 + $0x38] sm:$0xff]   ;;  %v2261_v1 = vmov 0.0   ;;  %v1852_v2 = vld [vmem:[#allocation10 + $0x30] sm:$0xff]   ;;  %vm2262_vm0 = vmmov 0   ;;  %v1853_v3 = vld [vmem:[#allocation10 + $0x28] sm:$0xff]   ;;  %s345_s11 = sld [smem:[#allocation8]] }
  0xac   :  { %1623 = vmatprep.subr.bf16.mxu0 %v2261_v1  ;;  %1643 = vmatprep.subr.bf16.mxu1 %v2261_v1  ;;  %v1859_v4 = vld [vmem:[#allocation12 + $0x38] sm:$0xff]   ;;  %v1854_v5 = vld [vmem:[#allocation10 + $0x20] sm:$0xff]   ;;  %v1860_v6 = vld [vmem:[#allocation12 + $0x30] sm:$0xff]   ;;  %s1452_s13 = sld [smem:[#allocation8 + $0x1]]  ;;  %s2263_s6 = smov 104   ;;  %vm1154_vm7 = vcmask 64512  }
  0xad   :  { %1624 = vmatpush3.bf16.msra.mxu0 %v1851_v0  ;;  %1639 = vmatprep.mubr.msk.bf16.mxu0 %vm2262_vm0, %v2261_v1  ;;  %v1855_v7 = vld [vmem:[#allocation10 + $0x18] sm:$0xff]   ;;  %v1861_v8 = vld [vmem:[#allocation12 + $0x28] sm:$0xff]   ;;  %v1856_v9 = vld [vmem:[#allocation10 + $0x10] sm:$0xff]   ;;  %s1462_s21 = sld [smem:[#allocation8 + $0x2]]  ;;  %s2264_s8 = smov 16   ;;  %vm1156_vm8 = vcmask 130048  }
  0xae   :  { %1625 = vmatprep.subr.bf16.mxu0 %v2261_v1  ;;  %1659 = vmatprep.mubr.msk.bf16.mxu1 %vm2262_vm0, %v2261_v1  ;;  %v1862_v10 = vld [vmem:[#allocation12 + $0x20] sm:$0xff]   ;;  %v1857_v11 = vld [vmem:[#allocation10 + $0x8] sm:$0xff]   ;;  %v1863_v12 = vld [vmem:[#allocation12 + $0x18] sm:$0xff]   ;;  %s1481_s22 = sld [smem:[#allocation8 + $0x3]]  ;;  %s2265_s25 = smov 112   ;;  %vm1399_vm11 = vcmask 195584  }
  0xaf   :  { %1644 = vmatpush3.bf16.msra.mxu1 %v1859_v4  ;;  %v1858_v13 = vld [vmem:[#allocation10] sm:$0xff]   ;;  %v1864_v15 = vld [vmem:[#allocation12 + $0x10] sm:$0xff]   ;;  %v1865_v17 = vld [vmem:[#allocation12 + $0x8] sm:$0xff]   ;;  %s1491_s23 = sld [smem:[#allocation8 + $0x4]]  ;;  %s2266_s26 = smov 32   ;;  %vm1401_vm12 = vcmask 261120  }
  0xb0   :  { %1645 = vmatprep.subr.bf16.mxu1 %v2261_v1  ;;  %v234_v14 = vld [vmem:[#allocation2] sm:$0xff]  ;;  %v1867_v19 = vld [vmem:[#allocation13 + $0x38] sm:$0xff]   ;;  %v1868_v20 = vld [vmem:[#allocation13 + $0x30] sm:$0xff]   ;;  %s1501_s24 = sld [smem:[#allocation8 + $0x5]]  ;;  %s2267_s27 = smov 56   ;;  %vm1403_vm13 = vcmask 326656  }
  0xb1   :  { %1626 = vmatpush3.bf16.msra.mxu0 %v1852_v2  ;;  %v252_v16 = vpack.c.bf16 %v234_v14, %v234_v14  ;;  %v1866_v18 = vld [vmem:[#allocation12] sm:$0xff]   ;;  %v1869_v21 = vld [vmem:[#allocation13 + $0x28] sm:$0xff]   ;;  %v1871_v23 = vld [vmem:[#allocation13 + $0x18] sm:$0xff]   ;;  %v347_v27 = vstv %s345_s11  ;;  %s1523_s1 = sld [smem:[#allocation8 + $0x6]]  ;;  %s2268_s3 = smov 24   ;;  %vm1405_vm14 = vcmask 392192  }
  0xb2   :  { %1627 = vmatprep.subr.bf16.mxu0 %v2261_v1  ;;  %v1870_v22 = vld [vmem:[#allocation13 + $0x20] sm:$0xff]   ;;  %v1872_v24 = vld [vmem:[#allocation13 + $0x10] sm:$0xff]   ;;  %v1873_v35 = vld [vmem:[#allocation13 + $0x8] sm:$0xff]   ;;  %v462_v45 = vstv %s1452_s13  ;;  %s2269_s28 = smov 48   ;;  %vm1407_vm15 = vcmask 457728   ;;  %s2270_s29 = smov [#allocation25]  }
  0xb3   :  { %1646 = vmatpush3.bf16.msra.mxu1 %v1860_v6  ;;  %v1434_v25 = vld [vmem:[#allocation9] ss:$0 sm:$0xff]  ;;  %v1874_v36 = vld [vmem:[#allocation13] sm:$0xff]   ;;  %v1883_v37 = vld [vmem:[#allocation15 + $0x38] sm:$0xff]   ;;  %v577_v4 = vstv %s1462_s21  ;;  %s1418_s10 = sshll.u32 %s2270_s29, 4  ;;  %s1419_s10 = int_to_ptr.vmem [resolvable:$true] %s1418_s10 }
  0xb4   :  { %1647 = vmatprep.subr.bf16.mxu1 %v2261_v1  ;;  %v1884_v38 = vld [vmem:[#allocation15 + $0x30] sm:$0xff]   ;;  %v1885_v39 = vld [vmem:[#allocation15 + $0x28] sm:$0xff]   ;;  %v1886_v40 = vld [vmem:[#allocation15 + $0x20] sm:$0xff]   ;;  %s2203_s30 = scalar_lea.vmem %s1419_s10, 128  ;;  %p2208_p1 = scmp.lt.s32.totalorder %s1419_s10, %s1419_s10 }
  0xb5   :  { %1628 = vmatpush3.bf16.msra.mxu0 %v1853_v3  ;;  %v1887_v41 = vld [vmem:[#allocation15 + $0x18] sm:$0xff]   ;;  %v1888_v42 = vld [vmem:[#allocation15 + $0x10] sm:$0xff]   ;;  %v1877_v55 = vld [vmem:[#allocation16 + $0x28] sm:$0xff]   ;;  %p2204_p0 = scmp.ne.s32.totalorder %s1419_s10, %s2203_s30  ;;  %p2209_p2 = scmp.lt.s32.totalorder %s2203_s30, %s2203_s30 }
  0xb6   :  { %1629 = vmatprep.subr.bf16.mxu0 %v2261_v1  ;;  %v1443_v43 = vld [vmem:[#allocation9 + $0x1] ss:$0 sm:$0xff]  ;;  %v1875_v51 = vld [vmem:[#allocation16 + $0x38] sm:$0xff]   ;;  %v1878_v56 = vld [vmem:[#allocation16 + $0x20] sm:$0xff]  }
  0xb7   :  { %1648 = vmatpush3.bf16.msra.mxu1 %v1861_v8  ;;  %v1876_v54 = vld [vmem:[#allocation16 + $0x30] sm:$0xff]   ;;  %v1879_v57 = vld [vmem:[#allocation16 + $0x18] sm:$0xff]   ;;  %v1881_v59 = vld [vmem:[#allocation16 + $0x8] sm:$0xff]   ;;  %p2210_p3 = por %p2209_p2, %p2208_p1 }
  0xb8   :  { %1649 = vmatprep.subr.bf16.mxu1 %v2261_v1  ;;  %v1880_v58 = vld [vmem:[#allocation16 + $0x10] sm:$0xff]   ;;  %v1882_v60 = vld [vmem:[#allocation16] sm:$0xff]   ;;  %v690_v61 = vld [vmem:[#allocation6] sm:$0xff] }
  0xb9   :  { %1630 = vmatpush3.bf16.msra.mxu0 %v1854_v5  ;;  %v708_v62 = vpack.c.bf16 %v690_v61, %v690_v61  ;;  %v1889_v63 = vld [vmem:[#allocation15 + $0x8] sm:$0xff]   ;;  %v1890_v0 = vld [vmem:[#allocation15] sm:$0xff]   ;;  %v1453_v2 = vld [vmem:[#allocation9 + $0x2] ss:$0 sm:$0xff]  ;;  %p2211_p4 = pnand %p2210_p3, %p2204_p0 }
  0xba   :  { %1631 = vmatprep.subr.bf16.mxu0 %v2261_v1  ;;  %v1893_v14 = vld [vmem:[#allocation18 + $0x28] sm:$0xff]   ;;  %v1914_v61 = vld [vmem:[#allocation21] sm:$0xff]   ;;  %vm1520_vm9 = vmpackc.low %vm1156_vm8, %vm1156_vm8 }
  0xbb   :  { %1650 = vmatpush3.bf16.msra.mxu1 %v1862_v10  ;;  %v1891_v10 = vld [vmem:[#allocation18 + $0x38] sm:$0xff]  }
  0xbc   :  { %1651 = vmatprep.subr.bf16.mxu1 %v2261_v1 }
  0xbd   :  { %1632 = vmatpush3.bf16.msra.mxu0 %v1855_v7 }
  0xbe   :  { %1633 = vmatprep.subr.bf16.mxu0 %v2261_v1 }
  0xbf   :  { %1652 = vmatpush3.bf16.msra.mxu1 %v1863_v12 }
  0xc0   :  { %1653 = vmatprep.subr.bf16.mxu1 %v2261_v1 }
  0xc1   :  { %1634 = vmatpush3.bf16.msra.mxu0 %v1856_v9 }
  0xc2   :  { %1635 = vmatprep.subr.bf16.mxu0 %v2261_v1 }
  0xc3   :  { %1654 = vmatpush3.bf16.msra.mxu1 %v1864_v15  ;;  %v1894_v15 = vld [vmem:[#allocation18 + $0x20] sm:$0xff]  }
  0xc4   :  { %1655 = vmatprep.subr.bf16.mxu1 %v2261_v1 }
  0xc5   :  { %1636 = vmatpush3.bf16.msra.mxu0 %v1857_v11 }
  0xc6   :  { %1637 = vmatprep.subr.bf16.mxu0 %v2261_v1 }
  0xc7   :  { %1656 = vmatpush3.bf16.msra.mxu1 %v1865_v17  ;;  %v1896_v17 = vld [vmem:[#allocation18 + $0x10] sm:$0xff]  }
  0xc8   :  { %1657 = vmatprep.subr.bf16.mxu1 %v2261_v1 }
  0xc9   :  { %1638 = vmatpush3.bf16.msra.mxu0 %v1858_v13  ;;  %v1892_v13 = vld [vmem:[#allocation18 + $0x30] sm:$0xff]  }
  0xca   :  { %1663 = vmatprep.subr.bf16.mxu0 %v2261_v1 }
  0xcb   :  { %1658 = vmatpush3.bf16.msra.mxu1 %v1866_v18  ;;  %v1897_v18 = vld [vmem:[#allocation18 + $0x8] sm:$0xff]  }
  0xcc   :  { %1640 = vmatmul.mubr.bf16.vlgmr.msra.gmra.mxu0 %v252_v16  ;;  %1683 = vmatprep.subr.bf16.mxu1 %v2261_v1  ;;  %v1895_v16 = vld [vmem:[#allocation18 + $0x18] sm:$0xff]  }
  0xcd   :  { %1679 = vmatprep.mubr.msk.bf16.mxu0 %vm2262_vm0, %v2261_v1  ;;  %1664 = vmatpush3.bf16.msra.mxu0 %v1867_v19  ;;  %v1472_v19 = vld [vmem:[#allocation9 + $0x4] ss:$0 sm:$0xff] }
  0xce   :  { %1665 = vmatprep.subr.bf16.mxu0 %v2261_v1 }
  0xd1   :  { %1666 = vmatpush3.bf16.msra.mxu0 %v1868_v20 }
  0xd2   :  { %1667 = vmatprep.subr.bf16.mxu0 %v2261_v1 }
  0xd5   :  { %1668 = vmatpush3.bf16.msra.mxu0 %v1869_v21  ;;  %v803_v21 = vstv %s1481_s22 }
  0xd6   :  { %1669 = vmatprep.subr.bf16.mxu0 %v2261_v1 }
  0xd9   :  { %1670 = vmatpush3.bf16.msra.mxu0 %v1870_v22 }
  0xda   :  { %1671 = vmatprep.subr.bf16.mxu0 %v2261_v1 }
  0xdd   :  { %1672 = vmatpush3.bf16.msra.mxu0 %v1871_v23  ;;  %v1898_v23 = vld [vmem:[#allocation18] sm:$0xff]  }
  0xde   :  { %1673 = vmatprep.subr.bf16.mxu0 %v2261_v1 }
  0xe1   :  { %1674 = vmatpush3.bf16.msra.mxu0 %v1872_v24 }
  0xe2   :  { %1675 = vmatprep.subr.bf16.mxu0 %v2261_v1 }
  0xe5   :  { %1676 = vmatpush3.bf16.msra.mxu0 %v1873_v35  ;;  %v1904_v35 = vld [vmem:[#allocation19 + $0x10] sm:$0xff]  }
  0xe6   :  { %1677 = vmatprep.subr.bf16.mxu0 %v2261_v1 }
  0xe9   :  { %1678 = vmatpush3.bf16.msra.mxu0 %v1874_v36  ;;  %v1905_v36 = vld [vmem:[#allocation19 + $0x8] sm:$0xff]  }
  0xea   :  { %1703 = vmatprep.subr.bf16.mxu0 %v2261_v1 }
 0x18c   :  { %v339_v26 = vpop.f32.mrf.mxu0 }
 0x18d   :  { %v340_v28 = vadd.f32 %v1434_v25, %v339_v26 }
 0x18e   :  { %v1641_v29 = vpop.f32.mrf.mxu0 }
 0x18f   :  { %vm346_vm1 = vcmp.gt.f32.partialorder %v340_v28, 0.0  ;;  %v348_v30 = vmul.f32 %v347_v27, %v340_v28 }
 0x190   :  { %v342_v31 = vpop.f32.mrf.mxu0 }
 0x191   :  { %v349_v32 = vsel %vm346_vm1, %v340_v28, %v348_v30  ;;  %v1899_v30 = vld [vmem:[#allocation19 + $0x38] sm:$0xff]   ;;  %v1900_v31 = vld [vmem:[#allocation19 + $0x30] sm:$0xff]  }
 0x192   :  { %v1642_v33 = vpop.f32.mrf.mxu0  ;;  %v367_v34 = vpack.c.bf16 %v349_v32, %v349_v32  ;;  %v1901_v32 = vld [vmem:[#allocation19 + $0x28] sm:$0xff]  }
 0x193   :  { %v1902_v33 = vld [vmem:[#allocation19 + $0x20] sm:$0xff]  }
 0x194   :  { %1660 = vmatmul.mubr.bf16.vlgmr.msra.gmra.mxu1 %v367_v34  ;;  %v1903_v34 = vld [vmem:[#allocation19 + $0x18] sm:$0xff]  }
 0x195   :  { %1699 = vmatprep.mubr.msk.bf16.mxu1 %vm2262_vm0, %v2261_v1  ;;  %1684 = vmatpush3.bf16.msra.mxu1 %v1883_v37  ;;  %v1906_v37 = vld [vmem:[#allocation19] sm:$0xff]  }
 0x196   :  { %1685 = vmatprep.subr.bf16.mxu1 %v2261_v1 }
 0x199   :  { %1686 = vmatpush3.bf16.msra.mxu1 %v1884_v38  ;;  %v1907_v38 = vld [vmem:[#allocation21 + $0x38] sm:$0xff]  }
 0x19a   :  { %1687 = vmatprep.subr.bf16.mxu1 %v2261_v1 }
 0x19d   :  { %1688 = vmatpush3.bf16.msra.mxu1 %v1885_v39  ;;  %v1908_v39 = vld [vmem:[#allocation21 + $0x30] sm:$0xff]  }
 0x19e   :  { %1689 = vmatprep.subr.bf16.mxu1 %v2261_v1 }
 0x1a1   :  { %1690 = vmatpush3.bf16.msra.mxu1 %v1886_v40  ;;  %v1909_v40 = vld [vmem:[#allocation21 + $0x28] sm:$0xff]  }
 0x1a2   :  { %1691 = vmatprep.subr.bf16.mxu1 %v2261_v1 }
 0x1a5   :  { %1692 = vmatpush3.bf16.msra.mxu1 %v1887_v41  ;;  %v1463_v41 = vld [vmem:[#allocation9 + $0x3] ss:$0 sm:$0xff] }
 0x1a6   :  { %1693 = vmatprep.subr.bf16.mxu1 %v2261_v1 }
 0x1a9   :  { %1694 = vmatpush3.bf16.msra.mxu1 %v1888_v42  ;;  %v1910_v42 = vld [vmem:[#allocation21 + $0x20] sm:$0xff]  }
 0x1aa   :  { %1695 = vmatprep.subr.bf16.mxu1 %v2261_v1 }
 0x1ad   :  { %1696 = vmatpush3.bf16.msra.mxu1 %v1889_v63 }
 0x1ae   :  { %1697 = vmatprep.subr.bf16.mxu1 %v2261_v1 }
 0x1b1   :  { %1698 = vmatpush3.bf16.msra.mxu1 %v1890_v0  ;;  %v1033_v0 = vstv %s1501_s24 }
 0x1b2   :  { %1723 = vmatprep.subr.bf16.mxu1 %v2261_v1 }
 0x254   :  { %v454_v44 = vpop.f32.mrf.mxu1 }
 0x255   :  { %v455_v46 = vadd.f32 %v1443_v43, %v454_v44 }
 0x256   :  { %v1661_v47 = vpop.f32.mrf.mxu1 }
 0x257   :  { %vm461_vm2 = vcmp.gt.f32.partialorder %v455_v46, 0.0  ;;  %v463_v48 = vmul.f32 %v462_v45, %v455_v46 }
 0x258   :  { %v457_v49 = vpop.f32.mrf.mxu1 }
 0x259   :  { %v464_v50 = vsel %vm461_vm2, %v455_v46, %v463_v48  ;;  %v1911_v46 = vld [vmem:[#allocation21 + $0x18] sm:$0xff]   ;;  %v1912_v49 = vld [vmem:[#allocation21 + $0x10] sm:$0xff]  }
 0x25a   :  { %v482_v52 = vpack.c.bf16 %v464_v50, %v464_v50  ;;  %v1662_v53 = vpop.f32.mrf.mxu1  ;;  %v1482_v50 = vld [vmem:[#allocation9 + $0x5] ss:$0 sm:$0xff] }
 0x25c   :  { %1680 = vmatmul.mubr.bf16.vlgmr.msra.gmra.mxu0 %v482_v52  ;;  %v918_v52 = vstv %s1491_s23 }
 0x25d   :  { %1704 = vmatpush3.bf16.msra.mxu0 %v1875_v51  ;;  %1719 = vmatprep.mubr.msk.bf16.mxu0 %vm2262_vm0, %v2261_v1 }
 0x25e   :  { %1705 = vmatprep.subr.bf16.mxu0 %v2261_v1 }
 0x261   :  { %1706 = vmatpush3.bf16.msra.mxu0 %v1876_v54 }
 0x262   :  { %1707 = vmatprep.subr.bf16.mxu0 %v2261_v1 }
 0x265   :  { %1708 = vmatpush3.bf16.msra.mxu0 %v1877_v55 }
 0x266   :  { %1709 = vmatprep.subr.bf16.mxu0 %v2261_v1 }
 0x269   :  { %1710 = vmatpush3.bf16.msra.mxu0 %v1878_v56 }
 0x26a   :  { %1711 = vmatprep.subr.bf16.mxu0 %v2261_v1 }
 0x26d   :  { %1712 = vmatpush3.bf16.msra.mxu0 %v1879_v57 }
 0x26e   :  { %1713 = vmatprep.subr.bf16.mxu0 %v2261_v1 }
 0x271   :  { %1714 = vmatpush3.bf16.msra.mxu0 %v1880_v58 }
 0x272   :  { %1715 = vmatprep.subr.bf16.mxu0 %v2261_v1 }
 0x275   :  { %1716 = vmatpush3.bf16.msra.mxu0 %v1881_v59 }
 0x276   :  { %1717 = vmatprep.subr.bf16.mxu0 %v2261_v1 }
 0x279   :  { %1718 = vmatpush3.bf16.msra.mxu0 %v1882_v60  ;;  %v1913_v60 = vld [vmem:[#allocation21 + $0x8] sm:$0xff]  }
 0x27a   :  { %1743 = vmatprep.subr.bf16.mxu0 %v2261_v1 }
 0x27c   :  { %1720 = vmatmul.mubr.bf16.vlgmr.msra.gmra.mxu0 %v708_v62  ;;  %v1492_v62 = vld [vmem:[#allocation9 + $0x6] ss:$0 sm:$0xff] }
 0x27d   :  { %1759 = vmatprep.mubr.msk.bf16.mxu0 %vm2262_vm0, %v2261_v1  ;;  %1744 = vmatpush3.bf16.msra.mxu0 %v1899_v30 }
 0x27e   :  { %1745 = vmatprep.subr.bf16.mxu0 %v2261_v1 }
 0x281   :  { %1746 = vmatpush3.bf16.msra.mxu0 %v1900_v31 }
 0x282   :  { %1747 = vmatprep.subr.bf16.mxu0 %v2261_v1 }
 0x285   :  { %1748 = vmatpush3.bf16.msra.mxu0 %v1901_v32 }
 0x286   :  { %1749 = vmatprep.subr.bf16.mxu0 %v2261_v1 }
 0x289   :  { %1750 = vmatpush3.bf16.msra.mxu0 %v1902_v33  ;;  %v1929_v33 = vld [vmem:[#allocation24 + $0x8] sm:$0xff]  }
 0x28a   :  { %1751 = vmatprep.subr.bf16.mxu0 %v2261_v1 }
 0x28d   :  { %1752 = vmatpush3.bf16.msra.mxu0 %v1903_v34  ;;  %v1930_v34 = vld [vmem:[#allocation24] sm:$0xff]  }
 0x28e   :  { %1753 = vmatprep.subr.bf16.mxu0 %v2261_v1 }
 0x291   :  { %1754 = vmatpush3.bf16.msra.mxu0 %v1904_v35  ;;  %v1511_v35 = vld [vmem:[#allocation9 + $0x8] ss:$0 sm:$0xff] }
 0x292   :  { %1755 = vmatprep.subr.bf16.mxu0 %v2261_v1 }
 0x295   :  { %1756 = vmatpush3.bf16.msra.mxu0 %v1905_v36 }
 0x296   :  { %1757 = vmatprep.subr.bf16.mxu0 %v2261_v1 }
 0x299   :  { %1758 = vmatpush3.bf16.msra.mxu0 %v1906_v37  ;;  %v1270_v37 = vstv %s1523_s1 }
 0x29a   :  { %1783 = vmatprep.subr.bf16.mxu0 %v2261_v1 }
 0x31c   :  { %v569_v3 = vpop.f32.mrf.mxu0 }
 0x31d   :  { %v570_v5 = vadd.f32 %v1453_v2, %v569_v3 }
 0x31e   :  { %v1681_v6 = vpop.f32.mrf.mxu0 }
 0x31f   :  { %vm576_vm3 = vcmp.gt.f32.partialorder %v570_v5, 0.0  ;;  %v578_v7 = vmul.f32 %v577_v4, %v570_v5 }
 0x320   :  { %v572_v8 = vpop.f32.mrf.mxu0 }
 0x321   :  { %v579_v9 = vsel %vm576_vm3, %v570_v5, %v578_v7 }
 0x322   :  { %v597_v11 = vpack.c.bf16 %v579_v9, %v579_v9  ;;  %v1682_v12 = vpop.f32.mrf.mxu0  ;;  %v1915_v9 = vld [vmem:[#allocation22 + $0x38] sm:$0xff]  }
 0x323   :  { %v1918_v12 = vld [vmem:[#allocation22 + $0x20] sm:$0xff]  }
 0x324   :  { %1700 = vmatmul.mubr.bf16.vlgmr.msra.gmra.mxu1 %v597_v11  ;;  %v1917_v11 = vld [vmem:[#allocation22 + $0x28] sm:$0xff]  }
 0x325   :  { %1724 = vmatpush3.bf16.msra.mxu1 %v1891_v10  ;;  %1739 = vmatprep.mubr.msk.bf16.mxu1 %vm2262_vm0, %v2261_v1  ;;  %v1916_v10 = vld [vmem:[#allocation22 + $0x30] sm:$0xff]  }
 0x326   :  { %1725 = vmatprep.subr.bf16.mxu1 %v2261_v1 }
 0x329   :  { %1726 = vmatpush3.bf16.msra.mxu1 %v1892_v13  ;;  %v1919_v13 = vld [vmem:[#allocation22 + $0x18] sm:$0xff]  }
 0x32a   :  { %1727 = vmatprep.subr.bf16.mxu1 %v2261_v1 }
 0x32d   :  { %1728 = vmatpush3.bf16.msra.mxu1 %v1893_v14  ;;  %v1920_v14 = vld [vmem:[#allocation22 + $0x10] sm:$0xff]  }
 0x32e   :  { %1729 = vmatprep.subr.bf16.mxu1 %v2261_v1 }
 0x331   :  { %1730 = vmatpush3.bf16.msra.mxu1 %v1894_v15  ;;  %v1921_v15 = vld [vmem:[#allocation22 + $0x8] sm:$0xff]  }
 0x332   :  { %1731 = vmatprep.subr.bf16.mxu1 %v2261_v1 }
 0x335   :  { %1732 = vmatpush3.bf16.msra.mxu1 %v1895_v16  ;;  %v1922_v16 = vld [vmem:[#allocation22] sm:$0xff]  }
 0x336   :  { %1733 = vmatprep.subr.bf16.mxu1 %v2261_v1 }
 0x339   :  { %1734 = vmatpush3.bf16.msra.mxu1 %v1896_v17  ;;  %v1923_v17 = vld [vmem:[#allocation24 + $0x38] sm:$0xff]  }
 0x33a   :  { %1735 = vmatprep.subr.bf16.mxu1 %v2261_v1 }
 0x33c   :  { %v795_v20 = vpop.f32.mrf.mxu0 }
 0x33d   :  { %v796_v22 = vadd.f32 %v1472_v19, %v795_v20  ;;  %1736 = vmatpush3.bf16.msra.mxu1 %v1897_v18  ;;  %v1502_v18 = vld [vmem:[#allocation9 + $0x7] ss:$0 sm:$0xff] }
 0x33e   :  { %v1721_v24 = vpop.f32.mrf.mxu0  ;;  %1737 = vmatprep.subr.bf16.mxu1 %v2261_v1  ;;  %v1924_v20 = vld [vmem:[#allocation24 + $0x30] sm:$0xff]  }
 0x33f   :  { %vm802_vm4 = vcmp.gt.f32.partialorder %v796_v22, 0.0  ;;  %v804_v25 = vmul.f32 %v803_v21, %v796_v22  ;;  %v1925_v24 = vld [vmem:[#allocation24 + $0x28] sm:$0xff]  }
 0x340   :  { %v798_v26 = vpop.f32.mrf.mxu0 }
 0x341   :  { %v805_v27 = vsel %vm802_vm4, %v796_v22, %v804_v25  ;;  %1738 = vmatpush3.bf16.msra.mxu1 %v1898_v23  ;;  %v1926_v26 = vld [vmem:[#allocation24 + $0x20] sm:$0xff]  }
 0x342   :  { %v823_v28 = vpack.c.bf16 %v805_v27, %v805_v27  ;;  %v1722_v29 = vpop.f32.mrf.mxu0  ;;  %1763 = vmatprep.subr.bf16.mxu1 %v2261_v1  ;;  %v1927_v27 = vld [vmem:[#allocation24 + $0x18] sm:$0xff]  }
 0x344   :  { %1740 = vmatmul.mubr.bf16.vlgmr.msra.gmra.mxu1 %v823_v28  ;;  %v1928_v28 = vld [vmem:[#allocation24 + $0x10] sm:$0xff]  }
 0x345   :  { %1779 = vmatprep.mubr.msk.bf16.mxu1 %vm2262_vm0, %v2261_v1  ;;  %1764 = vmatpush3.bf16.msra.mxu1 %v1907_v38 }
 0x346   :  { %1765 = vmatprep.subr.bf16.mxu1 %v2261_v1 }
 0x349   :  { %1766 = vmatpush3.bf16.msra.mxu1 %v1908_v39 }
 0x34a   :  { %1767 = vmatprep.subr.bf16.mxu1 %v2261_v1 }
 0x34d   :  { %1768 = vmatpush3.bf16.msra.mxu1 %v1909_v40 }
 0x34e   :  { %1769 = vmatprep.subr.bf16.mxu1 %v2261_v1 }
 0x351   :  { %1770 = vmatpush3.bf16.msra.mxu1 %v1910_v42 }
 0x352   :  { %1771 = vmatprep.subr.bf16.mxu1 %v2261_v1 }
 0x355   :  { %1772 = vmatpush3.bf16.msra.mxu1 %v1911_v46  ;;  %v1524_v46 = vld [vmem:[#allocation9 + $0x9] ss:$0 sm:$0xff] }
 0x356   :  { %1773 = vmatprep.subr.bf16.mxu1 %v2261_v1 }
 0x359   :  { %1774 = vmatpush3.bf16.msra.mxu1 %v1912_v49 }
 0x35a   :  { %1775 = vmatprep.subr.bf16.mxu1 %v2261_v1 }
 0x35d   :  { %1776 = vmatpush3.bf16.msra.mxu1 %v1913_v60 }
 0x35e   :  { %1777 = vmatprep.subr.bf16.mxu1 %v2261_v1 }
 0x361   :  { %1778 = vmatpush3.bf16.msra.mxu1 %v1914_v61 }
 0x362   :  { %1803 = vmatprep.subr.bf16.mxu1 %v2261_v1 }
 0x3e4   :  { %v684_v43 = vpop.f32.mrf.mxu1 }
 0x3e5   :  { %v2495_v44 = vadd.f32 %v1463_v41, %v684_v43 }
 0x3e6   :  { %v1701_v45 = vpop.f32.mrf.mxu1 }
 0x3e7   :  { %1147 = vrot.lane.b32.xlu0 %v2495_v44, %s2263_s6 }
 0x3e8   :  { %v687_v47 = vpop.f32.mrf.mxu1 }
 0x3ea   :  { %v1702_v48 = vpop.f32.mrf.mxu1 }
 0x404   :  { %v910_v51 = vpop.f32.mrf.mxu1 }
 0x405   :  { %v911_v53 = vadd.f32 %v1482_v50, %v910_v51 }
 0x406   :  { %v1741_v54 = vpop.f32.mrf.mxu1 }
 0x407   :  { %vm917_vm5 = vcmp.gt.f32.partialorder %v911_v53, 0.0  ;;  %v919_v55 = vmul.f32 %v918_v52, %v911_v53 }
 0x408   :  { %v913_v56 = vpop.f32.mrf.mxu1 }
 0x409   :  { %v920_v57 = vsel %vm917_vm5, %v911_v53, %v919_v55 }
 0x40a   :  { %v938_v58 = vpack.c.bf16 %v920_v57, %v920_v57  ;;  %v1742_v59 = vpop.f32.mrf.mxu1 }
 0x40c   :  { %1760 = vmatmul.mubr.bf16.vlgmr.msra.gmra.mxu0 %v938_v58 }
 0x40d   :  { %1799 = vmatprep.mubr.msk.bf16.mxu0 %vm2262_vm0, %v2261_v1  ;;  %1784 = vmatpush3.bf16.msra.mxu0 %v1915_v9 }
 0x40e   :  { %1785 = vmatprep.subr.bf16.mxu0 %v2261_v1 }
 0x411   :  { %1786 = vmatpush3.bf16.msra.mxu0 %v1916_v10 }
 0x412   :  { %1787 = vmatprep.subr.bf16.mxu0 %v2261_v1 }
 0x415   :  { %1788 = vmatpush3.bf16.msra.mxu0 %v1917_v11 }
 0x416   :  { %1789 = vmatprep.subr.bf16.mxu0 %v2261_v1 }
 0x419   :  { %1790 = vmatpush3.bf16.msra.mxu0 %v1918_v12 }
 0x41a   :  { %1791 = vmatprep.subr.bf16.mxu0 %v2261_v1 }
 0x41d   :  { %1792 = vmatpush3.bf16.msra.mxu0 %v1919_v13 }
 0x41e   :  { %1793 = vmatprep.subr.bf16.mxu0 %v2261_v1 }
 0x421   :  { %1794 = vmatpush3.bf16.msra.mxu0 %v1920_v14 }
 0x422   :  { %1795 = vmatprep.subr.bf16.mxu0 %v2261_v1 }
 0x425   :  { %1796 = vmatpush3.bf16.msra.mxu0 %v1921_v15 }
 0x426   :  { %1797 = vmatprep.subr.bf16.mxu0 %v2261_v1 }
 0x429   :  { %1798 = vmatpush3.bf16.msra.mxu0 %v1922_v16 }
 0x459   :  { %v1148_v29 = vpop.permute.xlu0 %1147 }
 0x4cc   :  { %v1025_v63 = vpop.f32.mrf.mxu0 }
 0x4cd   :  { %v1026_v2 = vadd.f32 %v1492_v62, %v1025_v63 }
 0x4ce   :  { %v1761_v3 = vpop.f32.mrf.mxu0 }
 0x4cf   :  { %vm1032_vm6 = vcmp.gt.f32.partialorder %v1026_v2, 0.0  ;;  %v1034_v4 = vmul.f32 %v1033_v0, %v1026_v2 }
 0x4d0   :  { %v1028_v5 = vpop.f32.mrf.mxu0 }
 0x4d1   :  { %v1035_v6 = vsel %vm1032_vm6, %v1026_v2, %v1034_v4 }
 0x4d2   :  { %v1053_v7 = vpack.c.bf16 %v1035_v6, %v1035_v6  ;;  %v1762_v8 = vpop.f32.mrf.mxu0 }
 0x4d4   :  { %1780 = vmatmul.mubr.bf16.vlgmr.msra.gmra.mxu1 %v1053_v7 }
 0x4d5   :  { %1819 = vmatprep.mubr.msk.bf16.mxu1 %vm2262_vm0, %v2261_v1  ;;  %1804 = vmatpush3.bf16.msra.mxu1 %v1923_v17  ;;  %vm1409_vm0 = vcmask 523264  }
 0x4d6   :  { %1805 = vmatprep.subr.bf16.mxu1 %v2261_v1 }
 0x4d9   :  { %1806 = vmatpush3.bf16.msra.mxu1 %v1924_v20 }
 0x4da   :  { %1807 = vmatprep.subr.bf16.mxu1 %v2261_v1 }
 0x4dd   :  { %1808 = vmatpush3.bf16.msra.mxu1 %v1925_v24 }
 0x4de   :  { %1809 = vmatprep.subr.bf16.mxu1 %v2261_v1 }
 0x4e1   :  { %1810 = vmatpush3.bf16.msra.mxu1 %v1926_v26 }
 0x4e2   :  { %1811 = vmatprep.subr.bf16.mxu1 %v2261_v1 }
 0x4e5   :  { %1812 = vmatpush3.bf16.msra.mxu1 %v1927_v27 }
 0x4e6   :  { %1813 = vmatprep.subr.bf16.mxu1 %v2261_v1 }
 0x4e9   :  { %1814 = vmatpush3.bf16.msra.mxu1 %v1928_v28 }
 0x4ea   :  { %1815 = vmatprep.subr.bf16.mxu1 %v2261_v1 }
 0x4ed   :  { %1816 = vmatpush3.bf16.msra.mxu1 %v1929_v33 }
 0x4ee   :  { %1817 = vmatprep.subr.bf16.mxu1 %v2261_v1 }
 0x4f1   :  { %1818 = vmatpush3.bf16.msra.mxu1 %v1930_v34 }
 0x594   :  { %v1140_v19 = vpop.f32.mrf.mxu1 }
 0x595   :  { %v1141_v21 = vadd.f32 %v1502_v18, %v1140_v19 }
 0x596   :  { %v1781_v22 = vpop.f32.mrf.mxu1 }
 0x597   :  { %1387 = vrot.lane.b32.xlu1 %v1141_v21, %s2264_s8  ;;  %1151 = vrot.lane.b32.xlu0 %v1141_v21, %s2265_s25 }
 0x598   :  { %v1143_v23 = vpop.f32.mrf.mxu1 }
 0x59a   :  { %v1782_v25 = vpop.f32.mrf.mxu1 }
 0x59b   :  { %1390 = vrot.lane.b32.xlu0 %v1141_v21, %s2266_s26 }
 0x59f   :  { %1396 = vrot.lane.b32.xlu0 %v1141_v21, %s2267_s27 }
 0x609   :  { %v1152_v30 = vpop.permute.xlu0 %1151  ;;  %v1388_v51 = vpop.permute.xlu1 %1387 }
 0x60a   :  { %v1155_v31 = vsel %vm1154_vm7, %v1148_v29, %v1152_v30 }
 0x60b   :  { %v1521_v32 = vpack.c.bf16 %v1155_v31, %v1155_v31 }
 0x60d   :  { %1800 = vmatmul.mubr.msk.bf16.vlgmr.msra.gmra.mxu0 %vm1520_vm9, %v1521_v32  ;;  %v1391_v52 = vpop.permute.xlu0 %1390 }
 0x611   :  { %v1397_v58 = vpop.permute.xlu0 %1396 }
 0x6cd   :  { %v1262_v36 = vpop.f32.mrf.mxu0 }
 0x6ce   :  { %v1263_v38 = vadd.f32 %v1511_v35, %v1262_v36 }
 0x6cf   :  { %v1801_v39 = vpop.f32.mrf.mxu0 }
 0x6d0   :  { %vm1269_vm10 = vcmp.gt.f32.partialorder %v1263_v38, 0.0  ;;  %v1271_v40 = vmul.f32 %v1270_v37, %v1263_v38 }
 0x6d1   :  { %v1265_v41 = vpop.f32.mrf.mxu0 }
 0x6d2   :  { %v1272_v42 = vsel %vm1269_vm10, %v1263_v38, %v1271_v40 }
 0x6d3   :  { %v1290_v43 = vpack.c.bf16 %v1272_v42, %v1272_v42  ;;  %v1802_v45 = vpop.f32.mrf.mxu0 }
 0x6d5   :  { %1820 = vmatmul.mubr.bf16.vlgmr.msra.gmra.mxu1 %v1290_v43 }
 0x795   :  { %v1377_v47 = vpop.f32.mrf.mxu1 }
 0x796   :  { %v1378_v48 = vadd.f32 %v1524_v46, %v1377_v47 }
 0x797   :  { %v1821_v49 = vpop.f32.mrf.mxu1 }
 0x798   :  { %1384 = vrot.lane.b32.xlu1 %v1378_v48, %s2268_s3 }
 0x799   :  { %v1380_v1 = vpop.f32.mrf.mxu1 }
 0x79b   :  { %v1822_v50 = vpop.f32.mrf.mxu1 }
 0x79c   :  { %1393 = vrot.lane.b32.xlu1 %v1141_v21, %s2269_s28 }
 0x80a   :  { %v1385_v53 = vpop.permute.xlu1 %1384 }
 0x80b   :  { %v1400_v54 = vsel %vm1399_vm11, %v2495_v44, %v1385_v53 }
 0x80c   :  { %v1402_v55 = vsel %vm1401_vm12, %v1400_v54, %v1388_v51 }
 0x80d   :  { %v1404_v56 = vsel %vm1403_vm13, %v1402_v55, %v1391_v52 }
 0x80e   :  { %v1394_v57 = vpop.permute.xlu1 %1393 }
 0x80f   :  { %v1406_v59 = vsel %vm1405_vm14, %v1404_v56, %v1394_v57 }
 0x810   :  { %v1408_v60 = vsel %vm1407_vm15, %v1406_v59, %v1397_v58 }
 0x811   :  { %v1410_v61 = vsel %vm1409_vm0, %v1408_v60, 0.0 }
 0x812   :  { %1411 = vst [vmem:[#allocation25] sm:$0xff] %v1410_v61 }
 0x813   :  { %2214 = shalt.err (!%p2211_p4)
}
 0x814   :  { %1421 = dma.vmem_to_hbm [thread:$0]  %s1419_s10, 128, %s2539_s14, [#allocation4]  }
 0x815   :  { %2241 = dma.done.wait [#allocation4], 128  }
 0x816   :  { %2242 = vsyncadd [#allocation4], 4294967168 }
 0x817   :  { %1425 = vsyncpa [#allocation3], 1 }
 0x818   :  { %1426 = vsyncpa [#allocation7], 1 }
 0x819   :  { %1427 = vsyncpa [#allocation11], 1 }
 0x81a   :  { %1428 = vsyncpa [#allocation14], 1 }
 0x81b   :  { %1429 = vsyncpa [#allocation17], 1 }
 0x81c   :  { %1430 = vsyncpa [#allocation20], 1 }
 0x81d   :  { %1431 = vsyncpa [#allocation23], 1 }
 0x81e   :  { %1432 = vsyncpa [#allocation4], 1 }
 0x81f   :  { %1433 = vsyncpa [#allocation5], 1 }

</bundles_post_ra>
